<compile_context>
chip_gen: v7x
topology: tpu7x:2x2x1
jax: 0.10.0
libtpu: 0.0.40
codegen_flags: <defaults>
</compile_context>

<pallas_src>
import jax
import jax.numpy as jnp
from jax.experimental import pallas as pl
from jax.experimental.pallas import tpu as pltpu

_LANE = 128
_TARGET_BLOCK_BYTES = 1 << 20            # ~1 MiB of logits per grid step
_VMEM_LIMIT_BYTES = 32 * 1024 * 1024     # explicit scoped-VMEM budget (all gens)


def _round_up(x, m):
    return ((x + m - 1) // m) * m


def _largest_divisor_leq(n, k):
    k = max(1, min(n, k))
    for d in range(k, 0, -1):
        if n % d == 0:
            return d
    return 1


def _make_ce_kernel(C, W, TILE_W, num_w_tiles):
    """Cross-entropy partial-sum kernel over a [Bt, C, TILE_W] logits block."""
    need_w_mask = (W % TILE_W) != 0

    def kernel(logits_ref, labels_ref, out_ref):
        x = logits_ref[...].astype(jnp.float32)        # [Bt, C, TILE_W] f32 math
        lbl = labels_ref[...].astype(jnp.int32)        # [Bt, 1, TILE_W]

        # Numerically-stable log-sum-exp over the class (sublane) axis; the
        # shifted logits xs are shared by the lse and the label gather.
        m = jnp.max(x, axis=1, keepdims=True)          # [Bt, 1, TILE_W]
        xs = x - m
        sumexp = jnp.sum(jnp.exp(xs), axis=1, keepdims=True)

        # Gather xs[label] per column via a one-hot compare against a tiny
        # (1, C, 1) iota (broadcast happens inside the compare).
        c_iota = jax.lax.broadcasted_iota(jnp.int32, (1, C, 1), 1)
        xs_true = jnp.sum(jnp.where(c_iota == lbl, xs, 0.0),
                          axis=1, keepdims=True)       # [Bt, 1, TILE_W]

        loss = jnp.log(sumexp) - xs_true               # per-sample NLL

        def write(total):
            out_ref[...] = jnp.full((1, 1, 1, 1), total, jnp.float32)

        if need_w_mask:
            j = pl.program_id(1)
            is_last = j == num_w_tiles - 1

            @pl.when(is_last)
            def _():
                # Remainder tile only: zero padded columns with a select so
                # garbage/inf in the padding cannot leak into the sum.
                w_idx = j * TILE_W + jax.lax.broadcasted_iota(
                    jnp.int32, loss.shape, 2)
                write(jnp.sum(jnp.where(w_idx < W, loss, 0.0)))

            @pl.when(jnp.logical_not(is_last))
            def _():
                write(jnp.sum(loss))
        else:
            write(jnp.sum(loss))

    return kernel


def ce_loss_pallas(logits, labels, *, target_block_bytes=_TARGET_BLOCK_BYTES):
    """logits: [B, C, W] float (any), labels: [B, 1, W] int -> scalar f32."""
    B, C, W = logits.shape
    labels = labels.reshape(B, 1, W)
    dbytes = jnp.dtype(logits.dtype).itemsize
    lbytes = jnp.dtype(labels.dtype).itemsize
    N = B * W

    # ---- byte-budgeted tiling -------------------------------------------
    # TILE_W: as wide as possible (lane aligned) within the logits budget.
    row_bytes = max(1, C * dbytes)
    max_w_by_budget = max(_LANE,
                          (target_block_bytes // row_bytes) // _LANE * _LANE)
    TILE_W = min(_round_up(W, _LANE), max_w_by_budget)
    if TILE_W >= W:
        TILE_W = W                    # single full-width tile, no masking
    num_w_tiles = pl.cdiv(W, TILE_W)

    # Bt: if a C x TILE_W slab is still small, pack several batch rows per
    # step (a divisor of B, so no batch-edge masking is ever needed).
    block_bytes = max(1, C * TILE_W * dbytes)
    budget_bt = max(1, target_block_bytes // block_bytes)
    Bt = B if budget_bt >= B else _largest_divisor_leq(B, budget_bt)
    num_b_tiles = B // Bt

    kernel = _make_ce_kernel(C, W, TILE_W, num_w_tiles)

    cost = pl.CostEstimate(
        flops=6 * N * C,
        transcendentals=N * C + N,                 # exp per class + log
        bytes_accessed=N * C * dbytes + N * lbytes
        + num_b_tiles * num_w_tiles * 4,
    )

    partials = pl.pallas_call(
        kernel,
        out_shape=jax.ShapeDtypeStruct((num_b_tiles, num_w_tiles, 1, 1),
                                       jnp.float32),
        grid_spec=pltpu.PrefetchScalarGridSpec(
            num_scalar_prefetch=0,
            grid=(num_b_tiles, num_w_tiles),
            in_specs=[
                pl.BlockSpec((Bt, C, TILE_W), lambda i, j: (i, 0, j)),
                pl.BlockSpec((Bt, 1, TILE_W), lambda i, j: (i, 0, j)),
            ],
            out_specs=pl.BlockSpec((1, 1, 1, 1), lambda i, j: (i, j, 0, 0)),
        ),
        compiler_params=pltpu.CompilerParams(
            dimension_semantics=("parallel", "parallel"),
            vmem_limit_bytes=_VMEM_LIMIT_BYTES),
        cost_estimate=cost,
    )(logits, labels)

    # Per-tile partial sums -> global mean over the true N (not padded N).
    return jnp.sum(partials) / jnp.float32(N)


def ce_loss_forward(out, label):
    """Mirror of CELoss.forward.

    out:   [B, C, 1, W] float logits (NCHW with H == 1)
    label: [B, 1, 1, W] integer class ids
    """
    B, C, _, W = out.shape
    # Explicit H-index (avoids jnp.squeeze eating the batch dim when B == 1)
    # and native [B, C, W] layout -- no transpose / extra HBM round trip.
    logits = out[:, :, 0, :]                                    # [B, C, W]
    label_dtype = jnp.int16 if C <= 32767 else jnp.int32        # shrink label bytes
    labels = label[:, 0, 0, :].astype(label_dtype).reshape(B, 1, W)
    return ce_loss_pallas(logits, labels)


if __name__ == "__main__":
    key = jax.random.PRNGKey(0)

    def reference(out, label):
        _, C, _, _ = out.shape
        o = jnp.transpose(out[:, :, 0, :], (0, 2, 1)).reshape(-1, C)
        l = label[:, 0, 0, :].reshape(-1)
        logp = jax.nn.log_softmax(o.astype(jnp.float32), axis=-1)
        return -jnp.mean(jnp.take_along_axis(logp, l[:, None], axis=-1))

    # 1) Module-shaped test: out [B, C, 1, W], label [B, 1, 1, W].
    B, C, W = 2, 4, 16
    k1, k2, k3 = jax.random.split(key, 3)
    out = jax.random.normal(k1, (B, C, 1, W), dtype=jnp.float32)
    label = jax.random.randint(k2, (B, 1, 1, W), 0, C, dtype=jnp.int32)
    loss = jax.block_until_ready(ce_loss_forward(out, label))
    ref = reference(out, label)
    assert jnp.allclose(loss, ref, atol=1e-5, rtol=1e-5), (loss, ref)

    # 2) Tiny-budget test: exercises W tiling + remainder masking + row
    #    batching (grid (3, 3)) at small shapes.
    B2, C2, W2 = 3, 5, 300
    k4, k5 = jax.random.split(k3)
    out2 = jax.random.normal(k4, (B2, C2, 1, W2), dtype=jnp.float32)
    label2 = jax.random.randint(k5, (B2, 1, 1, W2), 0, C2, dtype=jnp.int32)
    logits2 = out2[:, :, 0, :]
    labels2 = label2[:, 0, 0, :].astype(jnp.int16).reshape(B2, 1, W2)
    loss2 = jax.block_until_ready(
        ce_loss_pallas(logits2, labels2, target_block_bytes=4096))
    ref2 = reference(out2, label2)
    assert jnp.allclose(loss2, ref2, atol=1e-5, rtol=1e-5), (loss2, ref2)

    print("KERNEL_OK")
</pallas_src>

<mosaic_0001>
module attributes {stable_mosaic.version = 11 : i64} {
  func.func @kernel(%arg0: i32, %arg1: i32, %arg2: memref<2x4x16xf32, #tpu.memory_space<vmem>>, %arg3: memref<2x1x16xi16, #tpu.memory_space<vmem>>, %arg4: memref<1x1x1x1xf32, #tpu.memory_space<vmem>>) attributes {dimension_semantics = [#tpu.dimension_semantics<parallel>, #tpu.dimension_semantics<parallel>], iteration_bounds = array<i64: 1, 1>, scalar_prefetch = 0 : i64, scratch_operands = 0 : i64, tpu.core_type = #tpu.core_type<tc>, window_params = [{transform_indices = @transform_0, window_bounds = array<i64: 2, 4, 16>}, {transform_indices = @transform_1, window_bounds = array<i64: 2, 1, 16>}, {transform_indices = @transform_2, window_bounds = array<i64: 1, 1, 1, 1>}]} {
    %c0 = arith.constant 0 : index
    %c0_0 = arith.constant 0 : index
    %c0_1 = arith.constant 0 : index
    %0 = vector.load %arg2[%c0, %c0_0, %c0_1] : memref<2x4x16xf32, #tpu.memory_space<vmem>>, vector<2x4x16xf32>
    %c0_2 = arith.constant 0 : index
    %c0_3 = arith.constant 0 : index
    %c0_4 = arith.constant 0 : index
    %1 = vector.load %arg3[%c0_2, %c0_3, %c0_4] : memref<2x1x16xi16, #tpu.memory_space<vmem>>, vector<2x1x16xi16>
    %2 = arith.extsi %1 : vector<2x1x16xi16> to vector<2x1x16xi32>
    %cst = arith.constant dense<0xFF800000> : vector<2x16xf32>
    %3 = vector.multi_reduction <maximumf>, %0, %cst [1] : vector<2x4x16xf32> to vector<2x16xf32>
    %4 = vector.shape_cast %3 : vector<2x16xf32> to vector<2x1x16xf32>
    %5 = vector.broadcast %4 : vector<2x1x16xf32> to vector<2x4x16xf32>
    %6 = arith.subf %0, %5 : vector<2x4x16xf32>
    %7 = math.exp %6 : vector<2x4x16xf32>
    %cst_5 = arith.constant dense<0.000000e+00> : vector<2x16xf32>
    %8 = vector.multi_reduction <add>, %7, %cst_5 [1] : vector<2x4x16xf32> to vector<2x16xf32>
    %9 = vector.shape_cast %8 : vector<2x16xf32> to vector<2x1x16xf32>
    %10 = tpu.iota {dimensions = array<i32: 1>} : vector<1x4x1xi32>
    %11 = vector.broadcast %10 : vector<1x4x1xi32> to vector<2x4x16xi32>
    %12 = vector.broadcast %2 : vector<2x1x16xi32> to vector<2x4x16xi32>
    %13 = arith.cmpi eq, %11, %12 : vector<2x4x16xi32>
    %cst_6 = arith.constant 0.000000e+00 : f32
    %14 = vector.broadcast %cst_6 : f32 to vector<2x4x16xf32>
    %15 = arith.select %13, %6, %14 : vector<2x4x16xi1>, vector<2x4x16xf32>
    %cst_7 = arith.constant dense<0.000000e+00> : vector<2x16xf32>
    %16 = vector.multi_reduction <add>, %15, %cst_7 [1] : vector<2x4x16xf32> to vector<2x16xf32>
    %17 = vector.shape_cast %16 : vector<2x16xf32> to vector<2x1x16xf32>
    %18 = math.log %9 : vector<2x1x16xf32>
    %19 = arith.subf %18, %17 : vector<2x1x16xf32>
    %20 = vector.shape_cast %19 : vector<2x1x16xf32> to vector<1x2x1x16xf32>
    %cst_8 = arith.constant dense<0.000000e+00> : vector<1xf32>
    %21 = vector.multi_reduction <add>, %20, %cst_8 [1, 2, 3] : vector<1x2x1x16xf32> to vector<1xf32>
    %22 = vector.shape_cast %21 : vector<1xf32> to vector<1x1x1x1xf32>
    %23 = vector.extract %22[0, 0, 0, 0] : f32 from vector<1x1x1x1xf32>
    %24 = vector.broadcast %23 : f32 to vector<1x1x1x1xf32>
    %c0_9 = arith.constant 0 : index
    %c0_10 = arith.constant 0 : index
    %c0_11 = arith.constant 0 : index
    %c0_12 = arith.constant 0 : index
    %25 = vector.load %arg4[%c0_9, %c0_10, %c0_11, %c0_12] : memref<1x1x1x1xf32, #tpu.memory_space<vmem>>, vector<1x1x1x1xf32>
    tpu.vector_store %arg4[%c0_9, %c0_10, %c0_11, %c0_12], %24 {strides = array<i32>} : memref<1x1x1x1xf32, #tpu.memory_space<vmem>>, vector<1x1x1x1xf32>,
    return
  }
  func.func @transform_0(%arg0: i32, %arg1: i32) -> (i32, i32, i32) {
    %c0_i32 = arith.constant 0 : i32
    %c0_i32_0 = arith.constant 0 : i32
    return %arg0, %c0_i32, %arg1 : i32, i32, i32
  }
  func.func @transform_1(%arg0: i32, %arg1: i32) -> (i32, i32, i32) {
    %c0_i32 = arith.constant 0 : i32
    %c0_i32_0 = arith.constant 0 : i32
    return %arg0, %c0_i32, %arg1 : i32, i32, i32
  }
  func.func @transform_2(%arg0: i32, %arg1: i32) -> (i32, i32, i32, i32) {
    %c0_i32 = arith.constant 0 : i32
    %c0_i32_0 = arith.constant 0 : i32
    %c0_i32_1 = arith.constant 0 : i32
    return %arg0, %arg1, %c0_i32, %c0_i32_0 : i32, i32, i32, i32
  }
}

</mosaic_0001>

<bundles_post_ra>
// kernel: tpu_custom_call.1
= control target key start
LH: loop header
LB: loop body
LE: loop exit
PB: predicated region body
PF: predicated region fallthrough
CT: control target
= control target key end

     0   :  { %7 = vsyncpa [#allocation3], 0  ;;  %s249_s0 = inlined_call_operand.hbm [shape: f32[2,4,16], index: 0, kind: input, shape index: {}]   ;;  %s250_s1 = inlined_call_operand.vmem [shape: s16[2,1,16], index: 1, kind: input, shape index: {}]   ;;  %s251_s2 = inlined_call_operand.hbm [shape: f32[1,1,1,1], index: 2, kind: output, shape index: {}]  }
   0x1   :  { %8 = vsyncpa [#allocation4], 0  ;;  %s194_s9 = smov [#allocation2]   ;;  %s146_s13 = scalar_lea.hbm %s249_s0, 128 }
   0x2   :  { %s14_s10 = sshll.u32 %s194_s9, 4  ;;  %p147_p0 = scmp.ne.s32.totalorder %s249_s0, %s146_s13  ;;  %s15_s10 = int_to_ptr.vmem [resolvable:$true] %s14_s10 }
   0x3   :  { %p150_p1 = scmp.lt.u32.totalorder %s146_s13, %s249_s0 }
   0x5   :  { %p152_p2 = pnand %p150_p1, %p147_p0 }
   0x7   :  { %155 = shalt.err (!%p152_p2)
}
   0x8   :  { %s156_s18 = scalar_lea.vmem %s15_s10, 128  ;;  %p161_p4 = scmp.lt.s32.totalorder %s15_s10, %s15_s10 }
   0x9   :  { %p157_p3 = scmp.ne.s32.totalorder %s15_s10, %s156_s18  ;;  %p162_p5 = scmp.lt.s32.totalorder %s156_s18, %s156_s18 }
   0xb   :  { %p163_p6 = por %p162_p5, %p161_p4 }
   0xd   :  { %p164_p7 = pnand %p163_p6, %p157_p3 }
   0xf   :  { %167 = shalt.err (!%p164_p7)
}
  0x10   :  { %s195_s19 = smov 64   ;;  %s196_s20 = smov 4  }
  0x11   :  { %20 = dma.hbm_to_vmem [thread:$0]  %s249_s0, 128, %s15_s10, [#allocation3], %s195_s19, %s195_s19, %s196_s20  }
  0x12   :  { %190 = dma.done.wait [#allocation3], 128  }
  0x13   :  { %191 = vsyncadd [#allocation3], 4294967168  ;;  %vm32_vm0 = vcmask 125952   ;;  %v26_v0 = vld [vmem:[#allocation2] sm:$0xf]  ;;  %v67_v10 = vlaneseq  ;;  %vm101_vm3 = vcmask 122880  }
  0x14   :  { %v27_v1 = vld [vmem:[#allocation2 + $0x4] sm:$0xf]  ;;  %v33_v2 = vsel %vm32_vm0, %v26_v0, -inf  ;;  %v28_v16 = vld [vmem:[%s250_s1] sm:$0x1]  ;;  %vm115_vm4 = vcmask 0  }
  0x15   :  { %v40_v3 = vsel %vm32_vm0, %v27_v1, -inf  ;;  %v34_v4 = vrot.slane %v33_v2, 4  ;;  %v68_v15 = vshrl.u32 %v67_v10, 7  ;;  %v29_v17 = vld [vmem:[%s250_s1 + $0x1] sm:$0x1]  ;;  %v30_v20 = vunpack.c.l.b16 %v28_v16  ;;  %s197_s1 = smov [#allocation5]  }
  0x16   :  { %v41_v5 = vrot.slane %v40_v3, 4  ;;  %v31_v24 = vunpack.c.l.b16 %v29_v17  ;;  %s123_s26 = sshll.u32 %s197_s1, 4  ;;  %s124_s26 = int_to_ptr.vmem [resolvable:$true] %s123_s26 }
  0x17   :  { %v35_v6 = vmax.f32 %v33_v2, %v34_v4  ;;  %v71_v23 = vsub.s32 0, %v68_v15  ;;  %s168_s28 = scalar_lea.vmem %s124_s26, 16  ;;  %s172_s29 = scalar_lea.vmem %s124_s26, 32 }
  0x18   :  { %v42_v7 = vmax.f32 %v40_v3, %v41_v5  ;;  %p169_p8 = scmp.ne.s32.totalorder %s124_s26, %s168_s28  ;;  %p173_p9 = scmp.lt.s32.totalorder %s124_s26, %s124_s26 }
  0x19   :  { %v36_v8 = vrot.slane %v35_v6, 2  ;;  %v72_v27 = vrot.slane %v30_v20, %v71_v23  ;;  %v76_v28 = vrot.slane %v31_v24, %v71_v23  ;;  %p174_p10 = scmp.lt.s32.totalorder %s172_s29, %s168_s28 }
  0x1a   :  { %v43_v9 = vrot.slane %v42_v7, 2 }
  0x1b   :  { %v37_v11 = vmax.f32 %v35_v6, %v36_v8  ;;  %vm77_vm1 = vcmp.eq.s32.totalorder %v68_v15, %v72_v27  ;;  %vm78_vm2 = vcmp.eq.s32.totalorder %v68_v15, %v76_v28  ;;  %p175_p11 = por %p174_p10, %p173_p9 }
  0x1c   :  { %v44_v12 = vmax.f32 %v42_v7, %v43_v9 }
  0x1d   :  { %v38_v13 = vrot.slane %v37_v11, 1  ;;  %p176_p12 = pnand %p175_p11, %p169_p8 }
  0x1e   :  { %v45_v14 = vrot.slane %v44_v12, 1 }
  0x1f   :  { %v39_v18 = vmax.f32 %v37_v11, %v38_v13 }
  0x20   :  { %v46_v19 = vmax.f32 %v44_v12, %v45_v14 }
  0x21   :  { %v47_v21 = vsub.f32 %v26_v0, %v39_v18 }
  0x22   :  { %v48_v22 = vsub.f32 %v27_v1, %v46_v19 }
  0x23   :  { %v49_v25 = vmul.f32 1.442695, %v47_v21  ;;  %v79_v29 = vsel %vm77_vm1, %v47_v21, 0.0 }
  0x24   :  { %v51_v26 = vmul.f32 1.442695, %v48_v22  ;;  %v80_v30 = vsel %vm78_vm2, %v48_v22, 0.0  ;;  %v81_v32 = vsel %vm32_vm0, %v79_v29, 0.0 }
  0x25   :  { %138 = vpow2.f32 %v49_v25  ;;  %v88_v35 = vsel %vm32_vm0, %v80_v30, 0.0  ;;  %v82_v39 = vrot.slane %v81_v32, 4 }
  0x26   :  { %140 = vpow2.f32 %v51_v26  ;;  %v89_v41 = vrot.slane %v88_v35, 4 }
  0x27   :  { %v83_v45 = vadd.f32 %v82_v39, %v81_v32 }
  0x28   :  { %v90_v47 = vadd.f32 %v89_v41, %v88_v35 }
  0x29   :  { %v84_v51 = vrot.slane %v83_v45, 2 }
  0x2a   :  { %v91_v53 = vrot.slane %v90_v47, 2 }
  0x2b   :  { %v85_v55 = vadd.f32 %v84_v51, %v83_v45 }
  0x2c   :  { %v92_v56 = vadd.f32 %v91_v53, %v90_v47 }
  0x2d   :  { %v86_v57 = vrot.slane %v85_v55, 1 }
  0x2e   :  { %v93_v58 = vrot.slane %v92_v56, 1 }
  0x2f   :  { %v139_v31 = vpop.eup %138  ;;  %v87_v59 = vadd.f32 %v86_v57, %v85_v55 }
  0x30   :  { %v141_v33 = vpop.eup %140  ;;  %v53_v34 = vsel %vm32_vm0, %v139_v31, 0.0  ;;  %v94_v61 = vadd.f32 %v93_v58, %v92_v56 }
  0x31   :  { %v54_v36 = vrot.slane %v53_v34, 4  ;;  %v60_v37 = vsel %vm32_vm0, %v141_v33, 0.0 }
  0x32   :  { %v61_v38 = vrot.slane %v60_v37, 4 }
  0x33   :  { %v55_v40 = vadd.f32 %v54_v36, %v53_v34 }
  0x34   :  { %v62_v42 = vadd.f32 %v61_v38, %v60_v37 }
  0x35   :  { %v56_v43 = vrot.slane %v55_v40, 2 }
  0x36   :  { %v63_v44 = vrot.slane %v62_v42, 2 }
  0x37   :  { %v57_v46 = vadd.f32 %v56_v43, %v55_v40 }
  0x38   :  { %v64_v48 = vadd.f32 %v63_v44, %v62_v42 }
  0x39   :  { %v58_v49 = vrot.slane %v57_v46, 1 }
  0x3a   :  { %v65_v50 = vrot.slane %v64_v48, 1 }
  0x3b   :  { %v59_v52 = vadd.f32 %v58_v49, %v57_v46 }
  0x3c   :  { %v66_v54 = vadd.f32 %v65_v50, %v64_v48 }
  0x3d   :  { %142 = vlog2.f32 %v59_v52 }
  0x3e   :  { %144 = vlog2.f32 %v66_v54 }
  0x47   :  { %v143_v60 = vpop.eup %142 }
  0x48   :  { %v145_v62 = vpop.eup %144  ;;  %v96_v63 = vmul.f32 0.6931472, %v143_v60 }
  0x49   :  { %v98_v0 = vmul.f32 0.6931472, %v145_v62 }
  0x4a   :  { %v99_v1 = vsub.f32 %v96_v63, %v87_v59 }
  0x4b   :  { %v100_v2 = vsub.f32 %v98_v0, %v94_v61 }
  0x4c   :  { %v102_v3 = vsel %vm101_vm3, %v99_v1, 0.0 }
  0x4d   :  { %v103_v4 = vsel %vm101_vm3, %v100_v2, 0.0 }
  0x4e   :  { %v104_v5 = vadd.f32 %v103_v4, %v102_v3 }
  0x50   :  { %105 = vadd.xlane.f32.xlu0 %v104_v5 }
  0xdd   :  { %v106_v6 = vpop.xlane.xlu0 %105 }
  0xde   :  { %v107_v7 = vrot.slane %v106_v6, 4 }
  0xe0   :  { %v108_v8 = vadd.f32 %v107_v7, %v106_v6 }
  0xe2   :  { %v109_v9 = vrot.slane %v108_v8, 2 }
  0xe4   :  { %v110_v10 = vadd.f32 %v109_v9, %v108_v8 }
  0xe6   :  { %v111_v11 = vrot.slane %v110_v10, 1 }
  0xe8   :  { %v112_v12 = vadd.f32 %v111_v11, %v110_v10 }
  0xea   :  { %132 = vpush %v112_v12 }
 0x11b   :  { %s133_s27 = spop %132 }
 0x11c   :  { %v114_v13 = vstv %s133_s27 }
 0x11d   :  { %116 = vst.msk [vmem:[#allocation5] sm:$0x1] %vm115_vm4, %v114_v13 }
 0x11e   :  { %179 = shalt.err (!%p176_p12)
}
 0x11f   :  { %s180_s4 = scalar_lea.hbm %s251_s2, 16 }
 0x120   :  { %p181_p13 = scmp.ne.s32.totalorder %s251_s2, %s180_s4  ;;  %p184_p0 = scmp.lt.u32.totalorder %s180_s4, %s251_s2 }
 0x122   :  { %p186_p1 = pnand %p184_p0, %p181_p13 }
 0x124   :  { %189 = shalt.err (!%p186_p1)
}
 0x125   :  { %126 = dma.vmem_to_hbm [thread:$0]  %s124_s26, 16, %s251_s2, [#allocation4]  }
 0x126   :  { %192 = dma.done.wait [#allocation4], 16  }
 0x127   :  { %193 = vsyncadd [#allocation4], 4294967280 }
 0x128   :  { %130 = vsyncpa [#allocation3], 1 }
 0x129   :  { %131 = vsyncpa [#allocation4], 1 }

</bundles_post_ra>
